<compile_context>
chip_gen: v7x
topology: tpu7x:2x2x1
jax: 0.10.0
libtpu: 0.0.40
codegen_flags: <defaults>
</compile_context>

<pallas_src>
import jax
import jax.numpy as jnp
import numpy as np
from jax import lax
from jax.experimental import pallas as pl
from jax.experimental.pallas import tpu as pltpu


def _round_up(x, m):
    return ((x + m - 1) // m) * m


# ---------------------------------------------------------------------------
# Pallas kernel: one block of TB examples per grid step, four lane-dense matmuls.
#   tok_ref : (TB, W)       int32 tokens
#   rep_ref : (W, W*V)      0/1 replication matrix (repeat each token V times)
#   vpat_ref: (1, W*V)      per-lane vocab-id pattern [0..V-1, 0..V-1, ...]
#   w1_ref  : (W*V, L1*H)   embedding + conv1 + BN1 scale, banded over taps
#   t1_ref  : (1, L1*H)     conv1 bias * bn_scale + bn_shift, tiled over l
#   w2_ref  : (L1*H, L2*H)  conv2 + BN2 scale, banded over taps
#   t2_ref  : (1, L2*H)
#   wl_ref  : (L2*H, OUTP)  AvgPool(3,1) + channel-major flatten + Linear
#   bl_ref  : (1, OUTP)
#   o_ref   : (TB, OUTP)
# ---------------------------------------------------------------------------
def _cnn_encoder_kernel(tok_ref, rep_ref, vpat_ref, w1_ref, t1_ref,
                        w2_ref, t2_ref, wl_ref, bl_ref, o_ref):
    # Tokens -> lane-dense one-hot (TB, W*V): replicate each token value V
    # times along lanes with a tiny 0/1 matmul (no XLU concats / reshapes),
    # then compare against the static vocab-id lane pattern.
    tok = tok_ref[...].astype(jnp.float32)                                # (TB, W)
    tok_rep = jnp.dot(tok, rep_ref[...],
                      preferred_element_type=jnp.float32)                 # (TB, W*V)
    onehot = jnp.where(jnp.abs(tok_rep - vpat_ref[...]) < 0.5, 1.0, 0.0)

    # Embedding + Conv1 + BatchNorm1 (+ ReLU) as one banded matmul.
    y1 = jnp.maximum(
        jnp.dot(onehot, w1_ref[...], preferred_element_type=jnp.float32)
        + t1_ref[...], 0.0)                                               # (TB, L1*H)

    # Conv2 + BatchNorm2 (+ ReLU) as one banded matmul.
    y2 = jnp.maximum(
        jnp.dot(y1, w2_ref[...], preferred_element_type=jnp.float32)
        + t2_ref[...], 0.0)                                               # (TB, L2*H)

    # AvgPool1d(3, stride=1) + channel-major Flatten + Linear (+ ReLU).
    out = jnp.dot(y2, wl_ref[...], preferred_element_type=jnp.float32) + bl_ref[...]
    o_ref[...] = jnp.maximum(out, 0.0)


# ---------------------------------------------------------------------------
# Wrapper: fold parameters into banded lane-dense weights, then pallas_call.
# ---------------------------------------------------------------------------
def cnn_encoder_forward(tokens, params, *, kernel_size=3, block_batch=256):
    eps = 1e-5
    emb = jnp.asarray(params["emb"], jnp.float32)
    V, E = emb.shape
    B, W = tokens.shape
    K = kernel_size
    H = params["w1"].shape[0]
    out_dim = params["lin_w"].shape[0]
    L1 = W - (K - 1)
    L2 = L1 - (K - 1)
    Lp = L2 - 2
    OUTP = _round_up(out_dim, 128)           # lane-dense output width

    # ---- batch blocking -----------------------------------------------------
    B8 = _round_up(B, 8)
    TB = max(8, min(_round_up(block_batch, 8), B8))
    # Give the "parallel" batch-block axis >= 2 blocks whenever the batch allows
    # it so both v7x TensorCores get work (per-block VMEM is tiny either way).
    if B8 >= 16 and -(-B8 // TB) < 2:
        TB = _round_up(-(-B8 // 2), 8)
    Bp = _round_up(B, TB)
    nb = Bp // TB

    tok = jnp.asarray(tokens, jnp.int32)
    if Bp != B:
        tok = jnp.pad(tok, ((0, Bp - B), (0, 0)))   # token 0 is valid; rows sliced off

    # ---- fold parameters (wrapper-side glue, built once) --------------------
    s1 = params["bn1_g"] / jnp.sqrt(params["bn1_v"] + eps)
    t1c = params["b1"] * s1 + params["bn1_b"] - params["bn1_m"] * s1
    s2 = params["bn2_g"] / jnp.sqrt(params["bn2_v"] + eps)
    t2c = params["b2"] * s2 + params["bn2_b"] - params["bn2_m"] * s2

    # Embedding + conv1 + BN1 folded into a banded (W*V, L1*H) weight:
    #   w1b[w*V+v, l*H+h] = sum_e emb[v,e] * w1[h,e,w-l] * s1[h]  if 0<=w-l<K.
    w1_col = jnp.transpose(params["w1"], (2, 1, 0)) * s1[None, None, :]   # (K,E,H)
    a1 = jnp.einsum("ve,keh->vkh", emb, w1_col)                           # (V,K,H)
    band1 = np.zeros((W, K, L1), np.float32)
    for l in range(L1):
        for k in range(K):
            band1[l + k, k, l] = 1.0
    w1b = jnp.einsum("wkl,vkh->wvlh", jnp.asarray(band1), a1)
    w1b = w1b.reshape(W * V, L1 * H).astype(jnp.float32)
    t1b = jnp.tile(t1c, L1).reshape(1, L1 * H).astype(jnp.float32)

    # Conv2 + BN2 folded into a banded (L1*H, L2*H) weight:
    #   w2b[l1*H+i, l2*H+o] = w2[o,i,l1-l2] * s2[o]  if 0<=l1-l2<K.
    w2_col = jnp.transpose(params["w2"] * s2[:, None, None], (2, 1, 0))   # (K,Hin,Hout)
    band2 = np.zeros((L1, K, L2), np.float32)
    for l in range(L2):
        for k in range(K):
            band2[l + k, k, l] = 1.0
    w2b = jnp.einsum("akb,kio->aibo", jnp.asarray(band2), w2_col)
    w2b = w2b.reshape(L1 * H, L2 * H).astype(jnp.float32)
    t2b = jnp.tile(t2c, L2).reshape(1, L2 * H).astype(jnp.float32)

    # AvgPool1d(3,1) + channel-major flatten + Linear folded into (L2*H, OUTP):
    #   wlb[l2*H+h, o] = (1/3) * sum_{lp in {l2-2,l2-1,l2} ∩ [0,Lp)} lin_w[o, h*Lp+lp].
    lw_t = jnp.transpose(params["lin_w"].reshape(out_dim, H, Lp), (2, 1, 0))  # (Lp,H,out)
    pband = np.zeros((L2, Lp), np.float32)
    for lp in range(Lp):
        for d in range(3):
            pband[lp + d, lp] = 1.0
    wlb = jnp.einsum("ap,pho->aho", jnp.asarray(pband), lw_t) / 3.0
    wlb = wlb.reshape(L2 * H, out_dim)
    wlb = jnp.pad(wlb, ((0, 0), (0, OUTP - out_dim))).astype(jnp.float32)
    blb = jnp.pad(params["lin_b"], (0, OUTP - out_dim)).reshape(1, OUTP)
    blb = blb.astype(jnp.float32)

    # One-hot helpers (static): replication matrix and per-lane vocab ids.
    rep = jnp.asarray(np.kron(np.eye(W, dtype=np.float32),
                              np.ones((1, V), np.float32)))               # (W, W*V)
    vpat = jnp.asarray(np.tile(np.arange(V, dtype=np.float32), W)).reshape(1, W * V)

    # ---- Pallas call ---------------------------------------------------------
    flops = 2 * Bp * (W * W * V + W * V * L1 * H + L1 * H * L2 * H + L2 * H * OUTP)
    bytes_accessed = 4 * (Bp * W + Bp * OUTP
                          + W * W * V + W * V
                          + W * V * L1 * H + L1 * H
                          + L1 * H * L2 * H + L2 * H
                          + L2 * H * OUTP + OUTP)

    grid_spec = pltpu.PrefetchScalarGridSpec(
        num_scalar_prefetch=0,
        grid=(nb,),
        in_specs=[
            pl.BlockSpec((TB, W), lambda b: (b, 0)),            # tokens (only per-block DMA)
            pl.BlockSpec((W, W * V), lambda b: (0, 0)),         # replication matrix
            pl.BlockSpec((1, W * V), lambda b: (0, 0)),         # vocab-id pattern
            pl.BlockSpec((W * V, L1 * H), lambda b: (0, 0)),    # emb+conv1+bn1
            pl.BlockSpec((1, L1 * H), lambda b: (0, 0)),
            pl.BlockSpec((L1 * H, L2 * H), lambda b: (0, 0)),   # conv2+bn2
            pl.BlockSpec((1, L2 * H), lambda b: (0, 0)),
            pl.BlockSpec((L2 * H, OUTP), lambda b: (0, 0)),     # pool+flatten+linear
            pl.BlockSpec((1, OUTP), lambda b: (0, 0)),
        ],
        out_specs=pl.BlockSpec((TB, OUTP), lambda b: (b, 0)),
    )

    out = pl.pallas_call(
        _cnn_encoder_kernel,
        grid_spec=grid_spec,
        out_shape=jax.ShapeDtypeStruct((Bp, OUTP), jnp.float32),
        compiler_params=pltpu.CompilerParams(
            dimension_semantics=("parallel",)),                 # megacore / v7x TCs
        cost_estimate=pl.CostEstimate(
            flops=flops, transcendentals=0, bytes_accessed=bytes_accessed),
    )(tok, rep, vpat, w1b, t1b, w2b, t2b, wlb, blb)

    return out[:B, :out_dim]


# ---------------------------------------------------------------------------
# Pure-JAX reference (mirrors the PyTorch forward in eval mode).
# ---------------------------------------------------------------------------
def cnn_encoder_ref(tokens, params, *, kernel_size=3):
    eps = 1e-5
    x = jnp.take(params["emb"], tokens, axis=0)             # (B, W, E)
    x = jnp.transpose(x, (0, 2, 1))                         # (B, E, W)

    def conv1d(x, w, b):
        y = lax.conv_general_dilated(x, w, window_strides=(1,), padding="VALID",
                                     dimension_numbers=("NCH", "OIH", "NCH"))
        return y + b[None, :, None]

    def bn(x, g, bt, m, v):
        return (g[None, :, None] * (x - m[None, :, None])
                / jnp.sqrt(v[None, :, None] + eps) + bt[None, :, None])

    x = jax.nn.relu(bn(conv1d(x, params["w1"], params["b1"]),
                       params["bn1_g"], params["bn1_b"],
                       params["bn1_m"], params["bn1_v"]))
    x = jax.nn.relu(bn(conv1d(x, params["w2"], params["b2"]),
                       params["bn2_g"], params["bn2_b"],
                       params["bn2_m"], params["bn2_v"]))
    x = (x[:, :, :-2] + x[:, :, 1:-1] + x[:, :, 2:]) / 3.0   # AvgPool1d(3, 1)
    B = x.shape[0]
    x = x.reshape(B, -1)                                     # channel-major flatten
    x = jax.nn.relu(x @ params["lin_w"].T + params["lin_b"])
    return x


# ---------------------------------------------------------------------------
if __name__ == "__main__":
    # Small shapes consistent with the module.
    vocab_size, embed_dim, hidden_dim, win_size = 32, 8, 16, 16
    out_dim, kernel_size, B = 64, 3, 2
    Lp = win_size - (kernel_size - 1) * 2 - 2                # 10
    lin_in = hidden_dim * Lp                                 # 160

    key = jax.random.PRNGKey(0)
    ks = jax.random.split(key, 17)

    params = {
        "emb":    jax.random.normal(ks[0], (vocab_size, embed_dim), jnp.float32),
        "w1":     0.1 * jax.random.normal(ks[1], (hidden_dim, embed_dim, kernel_size), jnp.float32),
        "b1":     0.1 * jax.random.normal(ks[2], (hidden_dim,), jnp.float32),
        "bn1_g":  1.0 + 0.1 * jax.random.normal(ks[3], (hidden_dim,), jnp.float32),
        "bn1_b":  0.1 * jax.random.normal(ks[4], (hidden_dim,), jnp.float32),
        "bn1_m":  0.1 * jax.random.normal(ks[5], (hidden_dim,), jnp.float32),
        "bn1_v":  jax.random.uniform(ks[6], (hidden_dim,), jnp.float32, 0.5, 1.5),
        "w2":     0.1 * jax.random.normal(ks[7], (hidden_dim, hidden_dim, kernel_size), jnp.float32),
        "b2":     0.1 * jax.random.normal(ks[8], (hidden_dim,), jnp.float32),
        "bn2_g":  1.0 + 0.1 * jax.random.normal(ks[9], (hidden_dim,), jnp.float32),
        "bn2_b":  0.1 * jax.random.normal(ks[10], (hidden_dim,), jnp.float32),
        "bn2_m":  0.1 * jax.random.normal(ks[11], (hidden_dim,), jnp.float32),
        "bn2_v":  jax.random.uniform(ks[12], (hidden_dim,), jnp.float32, 0.5, 1.5),
        "lin_w":  0.05 * jax.random.normal(ks[13], (out_dim, lin_in), jnp.float32),
        "lin_b":  0.05 * jax.random.normal(ks[14], (out_dim,), jnp.float32),
    }

    # Test 1: tiny batch (single grid step).
    tokens = jax.random.randint(ks[15], (B, win_size), 0, vocab_size, dtype=jnp.int32)
    out = cnn_encoder_forward(tokens, params, kernel_size=kernel_size)
    out = jax.block_until_ready(out)
    ref = cnn_encoder_ref(tokens, params, kernel_size=kernel_size)
    np.testing.assert_allclose(np.asarray(out), np.asarray(ref), atol=2e-4, rtol=2e-4)
    assert out.shape == (B, out_dim)

    # Test 2: larger, non-aligned batch -> multiple grid steps + batch padding.
    B2 = 37
    tokens2 = jax.random.randint(ks[16], (B2, win_size), 0, vocab_size, dtype=jnp.int32)
    out2 = cnn_encoder_forward(tokens2, params, kernel_size=kernel_size, block_batch=16)
    out2 = jax.block_until_ready(out2)
    ref2 = cnn_encoder_ref(tokens2, params, kernel_size=kernel_size)
    np.testing.assert_allclose(np.asarray(out2), np.asarray(ref2), atol=2e-4, rtol=2e-4)
    assert out2.shape == (B2, out_dim)

    print("KERNEL_OK")
</pallas_src>

<mosaic_0001>
module attributes {stable_mosaic.version = 11 : i64} {
  func.func @_cnn_encoder_kernel(%arg0: i32, %arg1: memref<8x16xi32, #tpu.memory_space<vmem>>, %arg2: memref<16x512xf32, #tpu.memory_space<vmem>>, %arg3: memref<1x512xf32, #tpu.memory_space<vmem>>, %arg4: memref<512x224xf32, #tpu.memory_space<vmem>>, %arg5: memref<1x224xf32, #tpu.memory_space<vmem>>, %arg6: memref<224x192xf32, #tpu.memory_space<vmem>>, %arg7: memref<1x192xf32, #tpu.memory_space<vmem>>, %arg8: memref<192x128xf32, #tpu.memory_space<vmem>>, %arg9: memref<1x128xf32, #tpu.memory_space<vmem>>, %arg10: memref<8x128xf32, #tpu.memory_space<vmem>>) attributes {dimension_semantics = [#tpu.dimension_semantics<parallel>], iteration_bounds = array<i64: 1>, scalar_prefetch = 0 : i64, scratch_operands = 0 : i64, tpu.core_type = #tpu.core_type<tc>, window_params = [{transform_indices = @transform_0, window_bounds = array<i64: 8, 16>}, {pipeline_mode = #tpu.pipeline_mode<synchronous>, transform_indices = @transform_1, window_bounds = array<i64: 16, 512>}, {pipeline_mode = #tpu.pipeline_mode<synchronous>, transform_indices = @transform_2, window_bounds = array<i64: 1, 512>}, {pipeline_mode = #tpu.pipeline_mode<synchronous>, transform_indices = @transform_3, window_bounds = array<i64: 512, 224>}, {pipeline_mode = #tpu.pipeline_mode<synchronous>, transform_indices = @transform_4, window_bounds = array<i64: 1, 224>}, {pipeline_mode = #tpu.pipeline_mode<synchronous>, transform_indices = @transform_5, window_bounds = array<i64: 224, 192>}, {pipeline_mode = #tpu.pipeline_mode<synchronous>, transform_indices = @transform_6, window_bounds = array<i64: 1, 192>}, {pipeline_mode = #tpu.pipeline_mode<synchronous>, transform_indices = @transform_7, window_bounds = array<i64: 192, 128>}, {pipeline_mode = #tpu.pipeline_mode<synchronous>, transform_indices = @transform_8, window_bounds = array<i64: 1, 128>}, {transform_indices = @transform_9, window_bounds = array<i64: 8, 128>}]} {
    %c0 = arith.constant 0 : index
    %c0_0 = arith.constant 0 : index
    %0 = vector.load %arg1[%c0, %c0_0] : memref<8x16xi32, #tpu.memory_space<vmem>>, vector<8x16xi32>
    %1 = arith.sitofp %0 : vector<8x16xi32> to vector<8x16xf32>
    %c0_1 = arith.constant 0 : index
    %c0_2 = arith.constant 0 : index
    %2 = vector.load %arg2[%c0_1, %c0_2] : memref<16x512xf32, #tpu.memory_space<vmem>>, vector<16x512xf32>
    %cst = arith.constant dense<0.000000e+00> : vector<8x512xf32>
    %3 = tpu.matmul %1, %2, %cst {dimension_numbers = #tpu.dot_dimension_numbers<[1], [0], [0], [1], [0, 0, 1, 1], [], []>} : vector<8x16xf32>, vector<16x512xf32>, vector<8x512xf32> -> vector<8x512xf32>
    %c0_3 = arith.constant 0 : index
    %c0_4 = arith.constant 0 : index
    %4 = vector.load %arg3[%c0_3, %c0_4] : memref<1x512xf32, #tpu.memory_space<vmem>>, vector<1x512xf32>
    %5 = vector.broadcast %4 : vector<1x512xf32> to vector<8x512xf32>
    %6 = arith.subf %3, %5 : vector<8x512xf32>
    %7 = math.absf %6 : vector<8x512xf32>
    %cst_5 = arith.constant 5.000000e-01 : f32
    %8 = vector.broadcast %cst_5 : f32 to vector<8x512xf32>
    %9 = arith.cmpf olt, %7, %8 : vector<8x512xf32>
    %cst_6 = arith.constant 1.000000e+00 : f32
    %cst_7 = arith.constant 0.000000e+00 : f32
    %10 = vector.broadcast %cst_6 : f32 to vector<8x512xf32>
    %11 = vector.broadcast %cst_7 : f32 to vector<8x512xf32>
    %12 = arith.select %9, %10, %11 : vector<8x512xi1>, vector<8x512xf32>
    %c0_8 = arith.constant 0 : index
    %c0_9 = arith.constant 0 : index
    %13 = vector.load %arg4[%c0_8, %c0_9] : memref<512x224xf32, #tpu.memory_space<vmem>>, vector<512x224xf32>
    %cst_10 = arith.constant dense<0.000000e+00> : vector<8x224xf32>
    %14 = tpu.matmul %12, %13, %cst_10 {dimension_numbers = #tpu.dot_dimension_numbers<[1], [0], [0], [1], [0, 0, 1, 1], [], []>} : vector<8x512xf32>, vector<512x224xf32>, vector<8x224xf32> -> vector<8x224xf32>
    %c0_11 = arith.constant 0 : index
    %c0_12 = arith.constant 0 : index
    %15 = vector.load %arg5[%c0_11, %c0_12] : memref<1x224xf32, #tpu.memory_space<vmem>>, vector<1x224xf32>
    %16 = vector.broadcast %15 : vector<1x224xf32> to vector<8x224xf32>
    %17 = arith.addf %14, %16 : vector<8x224xf32>
    %cst_13 = arith.constant 0.000000e+00 : f32
    %18 = vector.broadcast %cst_13 : f32 to vector<8x224xf32>
    %19 = arith.maximumf %17, %18 : vector<8x224xf32>
    %c0_14 = arith.constant 0 : index
    %c0_15 = arith.constant 0 : index
    %20 = vector.load %arg6[%c0_14, %c0_15] : memref<224x192xf32, #tpu.memory_space<vmem>>, vector<224x192xf32>
    %cst_16 = arith.constant dense<0.000000e+00> : vector<8x192xf32>
    %21 = tpu.matmul %19, %20, %cst_16 {dimension_numbers = #tpu.dot_dimension_numbers<[1], [0], [0], [1], [0, 0, 1, 1], [], []>} : vector<8x224xf32>, vector<224x192xf32>, vector<8x192xf32> -> vector<8x192xf32>
    %c0_17 = arith.constant 0 : index
    %c0_18 = arith.constant 0 : index
    %22 = vector.load %arg7[%c0_17, %c0_18] : memref<1x192xf32, #tpu.memory_space<vmem>>, vector<1x192xf32>
    %23 = vector.broadcast %22 : vector<1x192xf32> to vector<8x192xf32>
    %24 = arith.addf %21, %23 : vector<8x192xf32>
    %cst_19 = arith.constant 0.000000e+00 : f32
    %25 = vector.broadcast %cst_19 : f32 to vector<8x192xf32>
    %26 = arith.maximumf %24, %25 : vector<8x192xf32>
    %c0_20 = arith.constant 0 : index
    %c0_21 = arith.constant 0 : index
    %27 = vector.load %arg8[%c0_20, %c0_21] : memref<192x128xf32, #tpu.memory_space<vmem>>, vector<192x128xf32>
    %cst_22 = arith.constant dense<0.000000e+00> : vector<8x128xf32>
    %28 = tpu.matmul %26, %27, %cst_22 {dimension_numbers = #tpu.dot_dimension_numbers<[1], [0], [0], [1], [0, 0, 1, 1], [], []>} : vector<8x192xf32>, vector<192x128xf32>, vector<8x128xf32> -> vector<8x128xf32>
    %c0_23 = arith.constant 0 : index
    %c0_24 = arith.constant 0 : index
    %29 = vector.load %arg9[%c0_23, %c0_24] : memref<1x128xf32, #tpu.memory_space<vmem>>, vector<1x128xf32>
    %30 = vector.broadcast %29 : vector<1x128xf32> to vector<8x128xf32>
    %31 = arith.addf %28, %30 : vector<8x128xf32>
    %cst_25 = arith.constant 0.000000e+00 : f32
    %32 = vector.broadcast %cst_25 : f32 to vector<8x128xf32>
    %33 = arith.maximumf %31, %32 : vector<8x128xf32>
    %c0_26 = arith.constant 0 : index
    %c0_27 = arith.constant 0 : index
    %34 = vector.load %arg10[%c0_26, %c0_27] : memref<8x128xf32, #tpu.memory_space<vmem>>, vector<8x128xf32>
    tpu.vector_store %arg10[%c0_26, %c0_27], %33 {strides = array<i32>} : memref<8x128xf32, #tpu.memory_space<vmem>>, vector<8x128xf32>,
    return
  }
  func.func @transform_0(%arg0: i32) -> (i32, i32) {
    %c0_i32 = arith.constant 0 : i32
    %c0_i32_0 = arith.constant 0 : i32
    return %arg0, %c0_i32 : i32, i32
  }
  func.func @transform_1(%arg0: i32) -> (i32, i32) {
    %c0_i32 = arith.constant 0 : i32
    %c0_i32_0 = arith.constant 0 : i32
    %c0_i32_1 = arith.constant 0 : i32
    return %c0_i32, %c0_i32_0 : i32, i32
  }
  func.func @transform_2(%arg0: i32) -> (i32, i32) {
    %c0_i32 = arith.constant 0 : i32
    %c0_i32_0 = arith.constant 0 : i32
    %c0_i32_1 = arith.constant 0 : i32
    return %c0_i32, %c0_i32_0 : i32, i32
  }
  func.func @transform_3(%arg0: i32) -> (i32, i32) {
    %c0_i32 = arith.constant 0 : i32
    %c0_i32_0 = arith.constant 0 : i32
    %c0_i32_1 = arith.constant 0 : i32
    return %c0_i32, %c0_i32_0 : i32, i32
  }
  func.func @transform_4(%arg0: i32) -> (i32, i32) {
    %c0_i32 = arith.constant 0 : i32
    %c0_i32_0 = arith.constant 0 : i32
    %c0_i32_1 = arith.constant 0 : i32
    return %c0_i32, %c0_i32_0 : i32, i32
  }
  func.func @transform_5(%arg0: i32) -> (i32, i32) {
    %c0_i32 = arith.constant 0 : i32
    %c0_i32_0 = arith.constant 0 : i32
    %c0_i32_1 = arith.constant 0 : i32
    return %c0_i32, %c0_i32_0 : i32, i32
  }
  func.func @transform_6(%arg0: i32) -> (i32, i32) {
    %c0_i32 = arith.constant 0 : i32
    %c0_i32_0 = arith.constant 0 : i32
    %c0_i32_1 = arith.constant 0 : i32
    return %c0_i32, %c0_i32_0 : i32, i32
  }
  func.func @transform_7(%arg0: i32) -> (i32, i32) {
    %c0_i32 = arith.constant 0 : i32
    %c0_i32_0 = arith.constant 0 : i32
    %c0_i32_1 = arith.constant 0 : i32
    return %c0_i32, %c0_i32_0 : i32, i32
  }
  func.func @transform_8(%arg0: i32) -> (i32, i32) {
    %c0_i32 = arith.constant 0 : i32
    %c0_i32_0 = arith.constant 0 : i32
    %c0_i32_1 = arith.constant 0 : i32
    return %c0_i32, %c0_i32_0 : i32, i32
  }
  func.func @transform_9(%arg0: i32) -> (i32, i32) {
    %c0_i32 = arith.constant 0 : i32
    %c0_i32_0 = arith.constant 0 : i32
    return %arg0, %c0_i32 : i32, i32
  }
}

</mosaic_0001>

<bundles_post_ra>
// kernel: tpu_custom_call.1
= control target key start
LH: loop header
LB: loop body
LE: loop exit
PB: predicated region body
PF: predicated region fallthrough
CT: control target
= control target key end

     0   :  { %v1046_v5 = vmov 0.0   ;;  %vm43_vm0 = vcmask 130048   ;;  %s1824_s0 = inlined_call_operand.vmem [shape: s32[8,16], index: 0, kind: input, shape index: {}]   ;;  %s1825_s1 = inlined_call_operand.vmem [shape: f32[16,512], index: 1, kind: input, shape index: {}]   ;;  %s1826_s2 = inlined_call_operand.vmem [shape: f32[1,512], index: 2, kind: input, shape index: {}]   ;;  %s1827_s3 = inlined_call_operand.vmem [shape: f32[512,224], index: 3, kind: input, shape index: {}]   ;;  %s1828_s4 = inlined_call_operand.vmem [shape: f32[1,224], index: 4, kind: input, shape index: {}]   ;;  %s1829_s5 = inlined_call_operand.vmem [shape: f32[224,192], index: 5, kind: input, shape index: {}]   ;;  %s1830_s6 = inlined_call_operand.vmem [shape: f32[1,192], index: 6, kind: input, shape index: {}]   ;;  %s1831_s7 = inlined_call_operand.vmem [shape: f32[192,128], index: 7, kind: input, shape index: {}]   ;;  %s1832_s8 = inlined_call_operand.vmem [shape: f32[1,128], index: 8, kind: input, shape index: {}]   ;;  %s1833_s9 = inlined_call_operand.hbm [shape: f32[8,128], index: 9, kind: output, shape index: {}]  }
   0x1   :  { %v36_v0 = vld [vmem:[%s1825_s1 + $0x8] sm:$0xff]  ;;  %v35_v2 = vld [vmem:[%s1825_s1] sm:$0xff]  ;;  %111 = vmatprep.mubr.f32.mxu1 %v1046_v5  ;;  %v38_v7 = vld [vmem:[%s1825_s1 + $0x18] sm:$0xff] }
   0x2   :  { %v40_v1 = vld [vmem:[%s1825_s1 + $0x28] sm:$0xff]  ;;  %v39_v4 = vld [vmem:[%s1825_s1 + $0x20] sm:$0xff]  ;;  %v42_v9 = vld [vmem:[%s1825_s1 + $0x38] sm:$0xff] }
   0x3   :  { %v786_v3 = vpack.c.bf16 %v40_v1, %v36_v0  ;;  %v33_v6 = vld [vmem:[%s1824_s0] sm:$0xff]  ;;  %v788_v8 = vpack.c.bf16 %v39_v4, %v35_v2  ;;  %v37_v10 = vld [vmem:[%s1825_s1 + $0x10] sm:$0xff]  ;;  %v790_v13 = vpack.c.bf16 %v42_v9, %v38_v7  ;;  %v228_v14 = vld [vmem:[%s1827_s3 + $0x8] sm:$0xff] }
   0x4   :  { %v41_v11 = vld [vmem:[%s1825_s1 + $0x30] sm:$0xff]  ;;  %v34_v12 = vcvt.s32.f32 %v33_v6  ;;  %v230_v15 = vld [vmem:[%s1827_s3 + $0x18] sm:$0xff]  ;;  %v227_v16 = vld [vmem:[%s1827_s3] sm:$0xff] }
   0x5   :  { %787 = vmatprep.subr.bf16.mxu1 %v786_v3  ;;  %v792_v17 = vpack.c.bf16 %v41_v11, %v37_v10  ;;  %v794_v18 = vpack.c.bf16 %v230_v15, %v228_v14  ;;  %v229_v19 = vld [vmem:[%s1827_s3 + $0x10] sm:$0xff]  ;;  %v232_v20 = vld [vmem:[%s1827_s3 + $0x28] sm:$0xff]  ;;  %v234_v21 = vld [vmem:[%s1827_s3 + $0x38] sm:$0xff] }
   0x6   :  { %789 = vmatpush1.bf16.msra.mxu1 %v788_v8  ;;  %v796_v22 = vpack.c.bf16 %v229_v19, %v227_v16  ;;  %v798_v23 = vpack.c.bf16 %v234_v21, %v232_v20  ;;  %v231_v24 = vld [vmem:[%s1827_s3 + $0x20] sm:$0xff]  ;;  %v233_v25 = vld [vmem:[%s1827_s3 + $0x30] sm:$0xff]  ;;  %v236_v26 = vld [vmem:[%s1827_s3 + $0x48] sm:$0xff] }
   0x7   :  { %791 = vmatprep.subr.bf16.mxu1 %v790_v13  ;;  %795 = vmatprep.subr.bf16.mxu0 %v794_v18  ;;  %v238_v27 = vld [vmem:[%s1827_s3 + $0x58] sm:$0xff]  ;;  %v800_v28 = vpack.c.bf16 %v233_v25, %v231_v24  ;;  %v235_v30 = vld [vmem:[%s1827_s3 + $0x40] sm:$0xff]  ;;  %v237_v31 = vld [vmem:[%s1827_s3 + $0x50] sm:$0xff] }
   0x8   :  { %797 = vmatpush1.bf16.msra.mxu0 %v796_v22  ;;  %v802_v29 = vpack.c.bf16 %v238_v27, %v236_v26  ;;  %v240_v32 = vld [vmem:[%s1827_s3 + $0x68] sm:$0xff]  ;;  %v242_v33 = vld [vmem:[%s1827_s3 + $0x78] sm:$0xff]  ;;  %v804_v34 = vpack.c.bf16 %v237_v31, %v235_v30  ;;  %v239_v36 = vld [vmem:[%s1827_s3 + $0x60] sm:$0xff] }
   0x9   :  { %777 = vmatmul.mubr.msk.f32.vlgmr.msra.gmra.mrb[0].mxu1 %vm43_vm0, %v34_v12  ;;  %799 = vmatprep.subr.bf16.mxu0 %v798_v23  ;;  %v806_v35 = vpack.c.bf16 %v242_v33, %v240_v32  ;;  %v241_v37 = vld [vmem:[%s1827_s3 + $0x70] sm:$0xff]  ;;  %v244_v38 = vld [vmem:[%s1827_s3 + $0x88] sm:$0xff]  ;;  %v246_v39 = vld [vmem:[%s1827_s3 + $0x98] sm:$0xff] }
   0xa   :  { %793 = vmatpush1.bf16.msra.mxu1 %v792_v17  ;;  %182 = vmatprep.mubr.f32.mxu1 %v1046_v5  ;;  %v808_v40 = vpack.c.bf16 %v241_v37, %v239_v36  ;;  %v810_v41 = vpack.c.bf16 %v246_v39, %v244_v38  ;;  %v243_v42 = vld [vmem:[%s1827_s3 + $0x80] sm:$0xff]  ;;  %v245_v43 = vld [vmem:[%s1827_s3 + $0x90] sm:$0xff]  ;;  %v248_v44 = vld [vmem:[%s1827_s3 + $0xa8] sm:$0xff] }
   0xb   :  { %v250_v45 = vld [vmem:[%s1827_s3 + $0xb8] sm:$0xff]  ;;  %v812_v46 = vpack.c.bf16 %v245_v43, %v243_v42  ;;  %v247_v48 = vld [vmem:[%s1827_s3 + $0xa0] sm:$0xff]  ;;  %v249_v49 = vld [vmem:[%s1827_s3 + $0xb0] sm:$0xff] }
   0xc   :  { %801 = vmatpush1.bf16.msra.mxu0 %v800_v28  ;;  %v814_v47 = vpack.c.bf16 %v250_v45, %v248_v44  ;;  %v252_v50 = vld [vmem:[%s1827_s3 + $0xc8] sm:$0xff]  ;;  %v254_v51 = vld [vmem:[%s1827_s3 + $0xd8] sm:$0xff] }
   0xd   :  { %778 = vmatmul.mubr.msk.f32.vlgmr.msra.gmra.mrb[2].mxu1 %vm43_vm0, %v34_v12  ;;  %803 = vmatprep.subr.bf16.mxu0 %v802_v29 }
  0x10   :  { %805 = vmatpush1.bf16.msra.mxu0 %v804_v34 }
  0x11   :  { %807 = vmatprep.subr.bf16.mxu0 %v806_v35 }
  0x14   :  { %809 = vmatpush1.bf16.msra.mxu0 %v808_v40 }
  0x15   :  { %811 = vmatprep.subr.bf16.mxu0 %v810_v41 }
  0x16   :  { %14 = vsyncpa [#allocation3], 0  ;;  %v816_v52 = vpack.c.bf16 %v249_v49, %v247_v48  ;;  %v818_v53 = vpack.c.bf16 %v254_v51, %v252_v50  ;;  %v251_v54 = vld [vmem:[%s1827_s3 + $0xc0] sm:$0xff]  ;;  %v253_v55 = vld [vmem:[%s1827_s3 + $0xd0] sm:$0xff]  ;;  %v191_v50 = vlaneseq  ;;  %vm579_vm5 = vcmask 785408   ;;  %s1049_s17 = smov [#allocation2]  }
  0x17   :  { %v256_v56 = vld [vmem:[%s1827_s3 + $0xe8] sm:$0xff]  ;;  %v258_v57 = vld [vmem:[%s1827_s3 + $0xf8] sm:$0xff]  ;;  %v820_v58 = vpack.c.bf16 %v253_v55, %v251_v54  ;;  %v255_v60 = vld [vmem:[%s1827_s3 + $0xe0] sm:$0xff]  ;;  %vm687_vm6 = vcmask 523264  }
  0x18   :  { %813 = vmatpush1.bf16.msra.mxu0 %v812_v46  ;;  %v822_v59 = vpack.c.bf16 %v258_v57, %v256_v56  ;;  %v257_v61 = vld [vmem:[%s1827_s3 + $0xf0] sm:$0xff]  ;;  %v260_v62 = vld [vmem:[%s1827_s3 + $0x108] sm:$0xff]  ;;  %v262_v63 = vld [vmem:[%s1827_s3 + $0x118] sm:$0xff]  ;;  %v1327_v51 = vshrl.u32 %v191_v50, 7 }
  0x19   :  { %815 = vmatprep.subr.bf16.mxu0 %v814_v47  ;;  %v824_v0 = vpack.c.bf16 %v257_v61, %v255_v60  ;;  %v826_v1 = vpack.c.bf16 %v262_v63, %v260_v62  ;;  %v259_v2 = vld [vmem:[%s1827_s3 + $0x100] sm:$0xff]  ;;  %v261_v3 = vld [vmem:[%s1827_s3 + $0x110] sm:$0xff]  ;;  %v264_v4 = vld [vmem:[%s1827_s3 + $0x128] sm:$0xff] }
  0x1a   :  { %v266_v5 = vld [vmem:[%s1827_s3 + $0x138] sm:$0xff]  ;;  %v828_v6 = vpack.c.bf16 %v261_v3, %v259_v2  ;;  %v263_v8 = vld [vmem:[%s1827_s3 + $0x120] sm:$0xff]  ;;  %v265_v9 = vld [vmem:[%s1827_s3 + $0x130] sm:$0xff] }
  0x1b   :  { %v830_v7 = vpack.c.bf16 %v266_v5, %v264_v4  ;;  %v268_v10 = vld [vmem:[%s1827_s3 + $0x148] sm:$0xff]  ;;  %v270_v11 = vld [vmem:[%s1827_s3 + $0x158] sm:$0xff]  ;;  %v832_v12 = vpack.c.bf16 %v265_v9, %v263_v8  ;;  %v267_v14 = vld [vmem:[%s1827_s3 + $0x140] sm:$0xff] }
  0x1c   :  { %817 = vmatpush1.bf16.msra.mxu0 %v816_v52  ;;  %v834_v13 = vpack.c.bf16 %v270_v11, %v268_v10  ;;  %v269_v15 = vld [vmem:[%s1827_s3 + $0x150] sm:$0xff]  ;;  %v272_v16 = vld [vmem:[%s1827_s3 + $0x168] sm:$0xff]  ;;  %v274_v17 = vld [vmem:[%s1827_s3 + $0x178] sm:$0xff]  ;;  %v201_v52 = vsub.s32 2, %v1327_v51 }
  0x1d   :  { %819 = vmatprep.subr.bf16.mxu0 %v818_v53  ;;  %v836_v18 = vpack.c.bf16 %v269_v15, %v267_v14  ;;  %v838_v19 = vpack.c.bf16 %v274_v17, %v272_v16  ;;  %v271_v20 = vld [vmem:[%s1827_s3 + $0x160] sm:$0xff]  ;;  %v273_v21 = vld [vmem:[%s1827_s3 + $0x170] sm:$0xff]  ;;  %v276_v22 = vld [vmem:[%s1827_s3 + $0x188] sm:$0xff] }
  0x1e   :  { %v278_v23 = vld [vmem:[%s1827_s3 + $0x198] sm:$0xff]  ;;  %v840_v24 = vpack.c.bf16 %v273_v21, %v271_v20  ;;  %v275_v26 = vld [vmem:[%s1827_s3 + $0x180] sm:$0xff]  ;;  %v277_v27 = vld [vmem:[%s1827_s3 + $0x190] sm:$0xff] }
  0x1f   :  { %v842_v25 = vpack.c.bf16 %v278_v23, %v276_v22  ;;  %v280_v28 = vld [vmem:[%s1827_s3 + $0x1a8] sm:$0xff]  ;;  %v282_v29 = vld [vmem:[%s1827_s3 + $0x1b8] sm:$0xff]  ;;  %v844_v30 = vpack.c.bf16 %v277_v27, %v275_v26  ;;  %v279_v32 = vld [vmem:[%s1827_s3 + $0x1a0] sm:$0xff] }
  0x20   :  { %821 = vmatpush1.bf16.msra.mxu0 %v820_v58  ;;  %v846_v31 = vpack.c.bf16 %v282_v29, %v280_v28  ;;  %v281_v33 = vld [vmem:[%s1827_s3 + $0x1b0] sm:$0xff]  ;;  %v284_v34 = vld [vmem:[%s1827_s3 + $0x1c8] sm:$0xff]  ;;  %v286_v35 = vld [vmem:[%s1827_s3 + $0x1d8] sm:$0xff] }
  0x21   :  { %823 = vmatprep.subr.bf16.mxu0 %v822_v59  ;;  %v848_v36 = vpack.c.bf16 %v281_v33, %v279_v32  ;;  %v850_v37 = vpack.c.bf16 %v286_v35, %v284_v34  ;;  %v283_v38 = vld [vmem:[%s1827_s3 + $0x1c0] sm:$0xff]  ;;  %v285_v39 = vld [vmem:[%s1827_s3 + $0x1d0] sm:$0xff]  ;;  %v288_v41 = vld [vmem:[%s1827_s3 + $0x1e8] sm:$0xff] }
  0x22   :  { %v852_v40 = vpack.c.bf16 %v285_v39, %v283_v38  ;;  %v290_v42 = vld [vmem:[%s1827_s3 + $0x1f8] sm:$0xff]  ;;  %v287_v44 = vld [vmem:[%s1827_s3 + $0x1e0] sm:$0xff]  ;;  %v289_v45 = vld [vmem:[%s1827_s3 + $0x1f0] sm:$0xff] }
  0x23   :  { %v854_v43 = vpack.c.bf16 %v290_v42, %v288_v41  ;;  %v856_v46 = vpack.c.bf16 %v289_v45, %v287_v44  ;;  %v292_v47 = vld [vmem:[%s1827_s3 + $0x208] sm:$0xff]  ;;  %v294_v48 = vld [vmem:[%s1827_s3 + $0x218] sm:$0xff]  ;;  %v1333_v53 = vld [vmem:[%s1826_s2] sm:$0xf] }
  0x24   :  { %825 = vmatpush1.bf16.msra.mxu0 %v824_v0  ;;  %v858_v49 = vpack.c.bf16 %v294_v48, %v292_v47  ;;  %v1336_v54 = vrot.slane %v1333_v53, %v201_v52  ;;  %v512_v55 = vld [vmem:[%s1829_s5 + $0x8] sm:$0xff]  ;;  %v514_v56 = vld [vmem:[%s1829_s5 + $0x18] sm:$0xff]  ;;  %v511_v57 = vld [vmem:[%s1829_s5] sm:$0xff] }
  0x25   :  { %827 = vmatprep.subr.bf16.mxu0 %v826_v1  ;;  %v922_v58 = vpack.c.bf16 %v514_v56, %v512_v55  ;;  %v513_v59 = vld [vmem:[%s1829_s5 + $0x10] sm:$0xff]  ;;  %v516_v60 = vld [vmem:[%s1829_s5 + $0x28] sm:$0xff]  ;;  %v518_v61 = vld [vmem:[%s1829_s5 + $0x38] sm:$0xff] }
  0x26   :  { %v924_v62 = vpack.c.bf16 %v513_v59, %v511_v57  ;;  %v926_v63 = vpack.c.bf16 %v518_v61, %v516_v60  ;;  %v515_v0 = vld [vmem:[%s1829_s5 + $0x20] sm:$0xff]  ;;  %v517_v1 = vld [vmem:[%s1829_s5 + $0x30] sm:$0xff]  ;;  %v520_v2 = vld [vmem:[%s1829_s5 + $0x48] sm:$0xff] }
  0x27   :  { %923 = vmatprep.subr.bf16.mxu1 %v922_v58  ;;  %v522_v3 = vld [vmem:[%s1829_s5 + $0x58] sm:$0xff]  ;;  %v928_v4 = vpack.c.bf16 %v517_v1, %v515_v0  ;;  %v524_v8 = vld [vmem:[%s1829_s5 + $0x68] sm:$0xff]  ;;  %v543_v42 = vld [vmem:[%s1829_s5 + $0x100] sm:$0xff] }
  0x28   :  { %829 = vmatpush1.bf16.msra.mxu0 %v828_v6  ;;  %925 = vmatpush1.bf16.msra.mxu1 %v924_v62  ;;  %v930_v5 = vpack.c.bf16 %v522_v3, %v520_v2  ;;  %v519_v6 = vld [vmem:[%s1829_s5 + $0x40] sm:$0xff]  ;;  %v526_v9 = vld [vmem:[%s1829_s5 + $0x78] sm:$0xff]  ;;  %v528_v14 = vld [vmem:[%s1829_s5 + $0x88] sm:$0xff] }
  0x29   :  { %831 = vmatprep.subr.bf16.mxu0 %v830_v7  ;;  %927 = vmatprep.subr.bf16.mxu1 %v926_v63  ;;  %v521_v7 = vld [vmem:[%s1829_s5 + $0x50] sm:$0xff]  ;;  %v934_v11 = vpack.c.bf16 %v526_v9, %v524_v8  ;;  %v530_v15 = vld [vmem:[%s1829_s5 + $0x98] sm:$0xff]  ;;  %v532_v20 = vld [vmem:[%s1829_s5 + $0xa8] sm:$0xff]  ;;  %v205_v9 = vsub.s32 3, %v1327_v51 }
  0x2a   :  { %v932_v10 = vpack.c.bf16 %v521_v7, %v519_v6  ;;  %v938_v17 = vpack.c.bf16 %v530_v15, %v528_v14  ;;  %v534_v21 = vld [vmem:[%s1829_s5 + $0xb8] sm:$0xff]  ;;  %v536_v26 = vld [vmem:[%s1829_s5 + $0xc8] sm:$0xff]  ;;  %v547_v48 = vld [vmem:[%s1829_s5 + $0x120] sm:$0xff]  ;;  %v1492_v6 = vsub.s32 1, %v1327_v51 }
  0x2b   :  { %v942_v23 = vpack.c.bf16 %v534_v21, %v532_v20  ;;  %v538_v27 = vld [vmem:[%s1829_s5 + $0xd8] sm:$0xff]  ;;  %v540_v32 = vld [vmem:[%s1829_s5 + $0xe8] sm:$0xff]  ;;  %v551_v57 = vld [vmem:[%s1829_s5 + $0x140] sm:$0xff] }
  0x2c   :  { %833 = vmatpush1.bf16.msra.mxu0 %v832_v12  ;;  %929 = vmatpush1.bf16.msra.mxu1 %v928_v4  ;;  %v523_v12 = vld [vmem:[%s1829_s5 + $0x60] sm:$0xff]  ;;  %v946_v29 = vpack.c.bf16 %v538_v27, %v536_v26  ;;  %v542_v33 = vld [vmem:[%s1829_s5 + $0xf8] sm:$0xff]  ;;  %v544_v38 = vld [vmem:[%s1829_s5 + $0x108] sm:$0xff]  ;;  %v198_v8 = vrot.slane %v1333_v53, %v1492_v6  ;;  %v1047_v27 = vmov 1.0  }
  0x2d   :  { %835 = vmatprep.subr.bf16.mxu0 %v834_v13  ;;  %931 = vmatprep.subr.bf16.mxu1 %v930_v5  ;;  %v525_v13 = vld [vmem:[%s1829_s5 + $0x70] sm:$0xff]  ;;  %v950_v35 = vpack.c.bf16 %v542_v33, %v540_v32  ;;  %v546_v39 = vld [vmem:[%s1829_s5 + $0x118] sm:$0xff]  ;;  %v548_v44 = vld [vmem:[%s1829_s5 + $0x128] sm:$0xff]  ;;  %v1489_v5 = vsub.s32 0, %v1327_v51 }
  0x2e   :  { %v936_v16 = vpack.c.bf16 %v525_v13, %v523_v12  ;;  %v954_v41 = vpack.c.bf16 %v546_v39, %v544_v38  ;;  %v550_v45 = vld [vmem:[%s1829_s5 + $0x138] sm:$0xff]  ;;  %v552_v50 = vld [vmem:[%s1829_s5 + $0x148] sm:$0xff]  ;;  %v553_v58 = vld [vmem:[%s1829_s5 + $0x150] sm:$0xff] }
  0x2f   :  { %v958_v47 = vpack.c.bf16 %v550_v45, %v548_v44  ;;  %v554_v52 = vld [vmem:[%s1829_s5 + $0x158] sm:$0xff]  ;;  %v556_v59 = vld [vmem:[%s1829_s5 + $0x168] sm:$0xff]  ;;  %v964_v61 = vpack.c.bf16 %v553_v58, %v551_v57  ;;  %v555_v63 = vld [vmem:[%s1829_s5 + $0x160] sm:$0xff]  ;;  %v194_v7 = vrot.slane %v1333_v53, %v1489_v5 }
  0x30   :  { %837 = vmatpush1.bf16.msra.mxu0 %v836_v18  ;;  %933 = vmatpush1.bf16.msra.mxu1 %v932_v10  ;;  %v527_v18 = vld [vmem:[%s1829_s5 + $0x80] sm:$0xff]  ;;  %v962_v56 = vpack.c.bf16 %v554_v52, %v552_v50  ;;  %v558_v60 = vld [vmem:[%s1829_s5 + $0x178] sm:$0xff]  ;;  %v557_v0 = vld [vmem:[%s1829_s5 + $0x170] sm:$0xff] }
  0x31   :  { %839 = vmatprep.subr.bf16.mxu0 %v838_v19  ;;  %935 = vmatprep.subr.bf16.mxu1 %v934_v11  ;;  %v529_v19 = vld [vmem:[%s1829_s5 + $0x90] sm:$0xff]  ;;  %v966_v62 = vpack.c.bf16 %v558_v60, %v556_v59  ;;  %v560_v1 = vld [vmem:[%s1829_s5 + $0x188] sm:$0xff]  ;;  %v562_v2 = vld [vmem:[%s1829_s5 + $0x198] sm:$0xff]  ;;  %v968_v3 = vpack.c.bf16 %v557_v0, %v555_v63 }
  0x32   :  { %v940_v22 = vpack.c.bf16 %v529_v19, %v527_v18  ;;  %v970_v4 = vpack.c.bf16 %v562_v2, %v560_v1  ;;  %v291_v14 = vld [vmem:[%s1827_s3 + $0x200] sm:$0xff]  ;;  %v293_v15 = vld [vmem:[%s1827_s3 + $0x210] sm:$0xff]  ;;  %v296_v18 = vld [vmem:[%s1827_s3 + $0x228] sm:$0xff] }
  0x33   :  { %v298_v51 = vld [vmem:[%s1827_s3 + $0x238] sm:$0xff]  ;;  %v860_v21 = vpack.c.bf16 %v293_v15, %v291_v14  ;;  %v299_v33 = vld [vmem:[%s1827_s3 + $0x240] sm:$0xff] }
  0x34   :  { %841 = vmatpush1.bf16.msra.mxu0 %v840_v24  ;;  %937 = vmatpush1.bf16.msra.mxu1 %v936_v16  ;;  %v531_v24 = vld [vmem:[%s1829_s5 + $0xa0] sm:$0xff]  ;;  %v206_v16 = vrot.slane %v1333_v53, %v205_v9  ;;  %v318_v57 = vld [vmem:[%s1827_s3 + $0x2d8] sm:$0xff] }
  0x35   :  { %843 = vmatprep.subr.bf16.mxu0 %v842_v25  ;;  %939 = vmatprep.subr.bf16.mxu1 %v938_v17  ;;  %v533_v25 = vld [vmem:[%s1829_s5 + $0xb0] sm:$0xff]  ;;  %v295_v53 = vld [vmem:[%s1827_s3 + $0x220] sm:$0xff]  ;;  %v322_v63 = vld [vmem:[%s1827_s3 + $0x2f8] sm:$0xff] }
  0x36   :  { %v944_v28 = vpack.c.bf16 %v533_v25, %v531_v24  ;;  %v862_v24 = vpack.c.bf16 %v298_v51, %v296_v18  ;;  %v297_v25 = vld [vmem:[%s1827_s3 + $0x230] sm:$0xff]  ;;  %v303_v39 = vld [vmem:[%s1827_s3 + $0x260] sm:$0xff]  ;;  %v332_v18 = vld [vmem:[%s1827_s3 + $0x348] sm:$0xff] }
  0x37   :  { %v307_v45 = vld [vmem:[%s1827_s3 + $0x280] sm:$0xff]  ;;  %v334_v51 = vld [vmem:[%s1827_s3 + $0x358] sm:$0xff] }
  0x38   :  { %845 = vmatpush1.bf16.msra.mxu0 %v844_v30  ;;  %941 = vmatpush1.bf16.msra.mxu1 %v940_v22  ;;  %v535_v30 = vld [vmem:[%s1829_s5 + $0xc0] sm:$0xff] }
  0x39   :  { %847 = vmatprep.subr.bf16.mxu0 %v846_v31  ;;  %943 = vmatprep.subr.bf16.mxu1 %v942_v23  ;;  %v537_v31 = vld [vmem:[%s1829_s5 + $0xd0] sm:$0xff]  ;;  %v311_v52 = vld [vmem:[%s1827_s3 + $0x2a0] sm:$0xff] }
  0x3a   :  { %v948_v34 = vpack.c.bf16 %v537_v31, %v535_v30  ;;  %v864_v31 = vpack.c.bf16 %v297_v25, %v295_v53  ;;  %v315_v60 = vld [vmem:[%s1827_s3 + $0x2c0] sm:$0xff]  ;;  %v336_v53 = vld [vmem:[%s1827_s3 + $0x368] sm:$0xff]  ;;  %v338_v25 = vld [vmem:[%s1827_s3 + $0x378] sm:$0xff] }
  0x3b   :  { %v319_v2 = vld [vmem:[%s1827_s3 + $0x2e0] sm:$0xff] }
  0x3c   :  { %849 = vmatpush1.bf16.msra.mxu0 %v848_v36  ;;  %945 = vmatpush1.bf16.msra.mxu1 %v944_v28  ;;  %v539_v36 = vld [vmem:[%s1829_s5 + $0xe0] sm:$0xff]  ;;  %v300_v28 = vld [vmem:[%s1827_s3 + $0x248] sm:$0xff] }
  0x3d   :  { %851 = vmatprep.subr.bf16.mxu0 %v850_v37  ;;  %947 = vmatprep.subr.bf16.mxu1 %v946_v29  ;;  %v541_v37 = vld [vmem:[%s1829_s5 + $0xf0] sm:$0xff]  ;;  %v302_v29 = vld [vmem:[%s1827_s3 + $0x258] sm:$0xff] }
  0x3e   :  { %v866_v32 = vpack.c.bf16 %v302_v29, %v300_v28  ;;  %v902_v28 = vpack.c.bf16 %v338_v25, %v336_v53  ;;  %v335_v29 = vld [vmem:[%s1827_s3 + $0x360] sm:$0xff] }
  0x3f   :  { %v664_v25 = vld [vmem:[%s1831_s7 + $0x40] sm:$0xff] }
  0x40   :  { %853 = vmatpush1.bf16.msra.mxu0 %v852_v40  ;;  %949 = vmatpush1.bf16.msra.mxu1 %v948_v34  ;;  %v952_v40 = vpack.c.bf16 %v541_v37, %v539_v36  ;;  %v301_v34 = vld [vmem:[%s1827_s3 + $0x250] sm:$0xff]  ;;  %v306_v36 = vld [vmem:[%s1827_s3 + $0x278] sm:$0xff] }
  0x41   :  { %855 = vmatprep.subr.bf16.mxu0 %v854_v43  ;;  %951 = vmatprep.subr.bf16.mxu1 %v950_v35  ;;  %v545_v43 = vld [vmem:[%s1829_s5 + $0x110] sm:$0xff]  ;;  %v304_v35 = vld [vmem:[%s1827_s3 + $0x268] sm:$0xff]  ;;  %v868_v37 = vpack.c.bf16 %v301_v34, %v299_v33 }
  0x42   :  { %v870_v38 = vpack.c.bf16 %v306_v36, %v304_v35  ;;  %v339_v35 = vld [vmem:[%s1827_s3 + $0x380] sm:$0xff]  ;;  %v341_v36 = vld [vmem:[%s1827_s3 + $0x390] sm:$0xff] }
  0x44   :  { %857 = vmatpush1.bf16.msra.mxu0 %v856_v46  ;;  %953 = vmatpush1.bf16.msra.mxu1 %v952_v40  ;;  %v956_v46 = vpack.c.bf16 %v545_v43, %v543_v42  ;;  %v305_v40 = vld [vmem:[%s1827_s3 + $0x270] sm:$0xff]  ;;  %v310_v42 = vld [vmem:[%s1827_s3 + $0x298] sm:$0xff] }
  0x45   :  { %859 = vmatprep.subr.bf16.mxu0 %v858_v49  ;;  %955 = vmatprep.subr.bf16.mxu1 %v954_v41  ;;  %v549_v49 = vld [vmem:[%s1829_s5 + $0x130] sm:$0xff]  ;;  %v308_v41 = vld [vmem:[%s1827_s3 + $0x288] sm:$0xff]  ;;  %v872_v43 = vpack.c.bf16 %v305_v40, %v303_v39  ;;  %v908_v39 = vpack.c.bf16 %v341_v36, %v339_v35  ;;  %v671_v36 = vld [vmem:[%s1831_s7 + $0x78] sm:$0xff] }
  0x46   :  { %v960_v55 = vpack.c.bf16 %v549_v49, %v547_v48  ;;  %v874_v44 = vpack.c.bf16 %v310_v42, %v308_v41  ;;  %v314_v48 = vld [vmem:[%s1827_s3 + $0x2b8] sm:$0xff]  ;;  %v343_v41 = vld [vmem:[%s1827_s3 + $0x3a0] sm:$0xff]  ;;  %v345_v42 = vld [vmem:[%s1827_s3 + $0x3b0] sm:$0xff] }
  0x47   :  { %v670_v35 = vld [vmem:[%s1831_s7 + $0x70] sm:$0xff] }
  0x48   :  { %957 = vmatpush1.bf16.msra.mxu1 %v956_v46  ;;  %v309_v46 = vld [vmem:[%s1827_s3 + $0x290] sm:$0xff] }
  0x49   :  { %959 = vmatprep.subr.bf16.mxu1 %v958_v47  ;;  %v312_v47 = vld [vmem:[%s1827_s3 + $0x2a8] sm:$0xff]  ;;  %v876_v49 = vpack.c.bf16 %v309_v46, %v307_v45  ;;  %v912_v45 = vpack.c.bf16 %v345_v42, %v343_v41  ;;  %v674_v41 = vld [vmem:[%s1831_s7 + $0x90] sm:$0xff]  ;;  %v675_v42 = vld [vmem:[%s1831_s7 + $0x98] sm:$0xff] }
  0x4a   :  { %v878_v50 = vpack.c.bf16 %v314_v48, %v312_v47  ;;  %v347_v47 = vld [vmem:[%s1827_s3 + $0x3c0] sm:$0xff]  ;;  %v349_v48 = vld [vmem:[%s1827_s3 + $0x3d0] sm:$0xff] }
  0x4c   :  { %961 = vmatpush1.bf16.msra.mxu1 %v960_v55  ;;  %v313_v55 = vld [vmem:[%s1827_s3 + $0x2b0] sm:$0xff] }
  0x4d   :  { %963 = vmatprep.subr.bf16.mxu1 %v962_v56  ;;  %v316_v56 = vld [vmem:[%s1827_s3 + $0x2c8] sm:$0xff]  ;;  %v880_v58 = vpack.c.bf16 %v313_v55, %v311_v52  ;;  %v916_v52 = vpack.c.bf16 %v349_v48, %v347_v47  ;;  %v678_v47 = vld [vmem:[%s1831_s7 + $0xb0] sm:$0xff]  ;;  %v679_v48 = vld [vmem:[%s1831_s7 + $0xb8] sm:$0xff] }
  0x4e   :  { %v882_v59 = vpack.c.bf16 %v318_v57, %v316_v56  ;;  %v351_v56 = vld [vmem:[%s1827_s3 + $0x3e0] sm:$0xff]  ;;  %v353_v57 = vld [vmem:[%s1827_s3 + $0x3f0] sm:$0xff] }
  0x50   :  { %965 = vmatpush1.bf16.msra.mxu1 %v964_v61  ;;  %v317_v61 = vld [vmem:[%s1827_s3 + $0x2d0] sm:$0xff] }
  0x51   :  { %967 = vmatprep.subr.bf16.mxu1 %v966_v62  ;;  %v320_v62 = vld [vmem:[%s1827_s3 + $0x2e8] sm:$0xff]  ;;  %v884_v0 = vpack.c.bf16 %v317_v61, %v315_v60  ;;  %v559_v60 = vld [vmem:[%s1829_s5 + $0x180] sm:$0xff]  ;;  %v561_v61 = vld [vmem:[%s1829_s5 + $0x190] sm:$0xff] }
  0x52   :  { %v886_v1 = vpack.c.bf16 %v322_v63, %v320_v62  ;;  %v972_v62 = vpack.c.bf16 %v561_v61, %v559_v60  ;;  %v564_v63 = vld [vmem:[%s1829_s5 + $0x1a8] sm:$0xff] }
  0x54   :  { %969 = vmatpush1.bf16.msra.mxu1 %v968_v3  ;;  %v321_v3 = vld [vmem:[%s1827_s3 + $0x2f0] sm:$0xff] }
  0x55   :  { %971 = vmatprep.subr.bf16.mxu1 %v970_v4  ;;  %v324_v4 = vld [vmem:[%s1827_s3 + $0x308] sm:$0xff] }
  0x58   :  { %973 = vmatpush1.bf16.msra.mxu1 %v972_v62  ;;  %v784_v62 = vld [vmem:[%s1832_s8] ss:$0 sm:$0xff] }
  0xdc   :  { %v113_v10 = vpop.f32.mrb[0].mxu1 }
  0xdd   :  { %v211_v11 = vsub.f32 %v113_v10, %v194_v7  ;;  %v115_v12 = vpop.f32.mrb[1].mxu1  ;;  %v326_v7 = vld [vmem:[%s1827_s3 + $0x318] sm:$0xff]  ;;  %v323_v10 = vld [vmem:[%s1827_s3 + $0x300] sm:$0xff] }
  0xde   :  { %v212_v13 = vsub.f32 %v115_v12, %v198_v8  ;;  %v888_v8 = vpack.c.bf16 %v321_v3, %v319_v2  ;;  %v890_v9 = vpack.c.bf16 %v326_v7, %v324_v4  ;;  %v328_v12 = vld [vmem:[%s1827_s3 + $0x328] sm:$0xff]  ;;  %v355_v2 = vld [vmem:[%s1828_s4] sm:$0x3] }
  0xdf   :  { %v215_v17 = vand.u32 2147483647, %v211_v11  ;;  %v325_v11 = vld [vmem:[%s1827_s3 + $0x310] sm:$0xff]  ;;  %v360_v3 = vrot.slane %v355_v2, %v1489_v5  ;;  %v364_v4 = vrot.slane %v355_v2, %v1492_v6 }
  0xe0   :  { %v216_v19 = vand.u32 2147483647, %v212_v13  ;;  %v1512_v20 = vpop.f32.mrb[2].mxu1  ;;  %v330_v13 = vld [vmem:[%s1827_s3 + $0x338] sm:$0xff]  ;;  %v892_v14 = vpack.c.bf16 %v325_v11, %v323_v10  ;;  %v656_v10 = vld [vmem:[%s1831_s7] sm:$0xff]  ;;  %v657_v11 = vld [vmem:[%s1831_s7 + $0x8] sm:$0xff] }
  0xe1   :  { %v213_v22 = vsub.f32 %v1512_v20, %v1336_v54  ;;  %v186_v23 = vpop.f32.mrb[3].mxu1  ;;  %vm219_vm2 = vcmp.lt.f32.partialorder %v215_v17, 0.5  ;;  %v894_v15 = vpack.c.bf16 %v330_v13, %v328_v12  ;;  %v329_v17 = vld [vmem:[%s1827_s3 + $0x330] sm:$0xff]  ;;  %v566_v54 = vld [vmem:[%s1829_s5 + $0x1b8] sm:$0xff] }
  0xe2   :  { %vm220_vm1 = vcmp.lt.f32.partialorder %v216_v19, 0.5  ;;  %v214_v26 = vsub.f32 %v186_v23, %v206_v16  ;;  %v327_v16 = vld [vmem:[%s1827_s3 + $0x320] sm:$0xff]  ;;  %v974_v20 = vpack.c.bf16 %v566_v54, %v564_v63 }
  0xe3   :  { %779 = vmatprep.mubr.msk.f32.mxu0 %vm220_vm1, %v1047_v27  ;;  %v896_v19 = vpack.c.bf16 %v329_v17, %v327_v16  ;;  %v331_v23 = vld [vmem:[%s1827_s3 + $0x340] sm:$0xff]  ;;  %v658_v16 = vld [vmem:[%s1831_s7 + $0x10] sm:$0xff]  ;;  %v659_v17 = vld [vmem:[%s1831_s7 + $0x18] sm:$0xff] }
  0xe4   :  { %780 = vmatmul.mubr.msk.f32.vlgmr.msra.gmra.mrb[0].mxu0 %vm219_vm2, %v1047_v27  ;;  %v218_v30 = vand.u32 2147483647, %v214_v26  ;;  %975 = vmatprep.subr.bf16.mxu1 %v974_v20 }
  0xe5   :  { %861 = vmatpush1.bf16.msra.mxu0 %v860_v21  ;;  %v898_v21 = vpack.c.bf16 %v334_v51, %v332_v18  ;;  %v982_v18 = vpack.c.bf16 %v659_v17, %v658_v16  ;;  %v660_v51 = vld [vmem:[%s1831_s7 + $0x20] sm:$0xff] }
  0xe6   :  { %863 = vmatprep.subr.bf16.mxu0 %v862_v24  ;;  %vm222_vm3 = vcmp.lt.f32.partialorder %v218_v30, 0.5  ;;  %v333_v24 = vld [vmem:[%s1827_s3 + $0x350] sm:$0xff] }
  0xe7   :  { %781 = vmatprep.mubr.msk.f32.mxu0 %vm222_vm3, %v1047_v27  ;;  %v900_v26 = vpack.c.bf16 %v333_v24, %v331_v23  ;;  %v337_v30 = vld [vmem:[%s1827_s3 + $0x370] sm:$0xff]  ;;  %v663_v24 = vld [vmem:[%s1831_s7 + $0x38] sm:$0xff] }
  0xe8   :  { %v904_v33 = vpack.c.bf16 %v337_v30, %v335_v29  ;;  %v662_v23 = vld [vmem:[%s1831_s7 + $0x30] sm:$0xff]  ;;  %v667_v30 = vld [vmem:[%s1831_s7 + $0x58] sm:$0xff] }
  0xe9   :  { %865 = vmatpush1.bf16.msra.mxu0 %v864_v31  ;;  %v340_v31 = vld [vmem:[%s1827_s3 + $0x388] sm:$0xff]  ;;  %v988_v53 = vpack.c.bf16 %v663_v24, %v662_v23  ;;  %v666_v29 = vld [vmem:[%s1831_s7 + $0x50] sm:$0xff] }
  0xea   :  { %867 = vmatprep.subr.bf16.mxu0 %v866_v32  ;;  %v342_v32 = vld [vmem:[%s1827_s3 + $0x398] sm:$0xff] }
  0xeb   :  { %v906_v34 = vpack.c.bf16 %v342_v32, %v340_v31  ;;  %v994_v31 = vpack.c.bf16 %v667_v30, %v666_v29  ;;  %v668_v32 = vld [vmem:[%s1831_s7 + $0x60] sm:$0xff] }
  0xed   :  { %869 = vmatpush1.bf16.msra.mxu0 %v868_v37  ;;  %v344_v37 = vld [vmem:[%s1827_s3 + $0x3a8] sm:$0xff] }
  0xee   :  { %871 = vmatprep.subr.bf16.mxu0 %v870_v38  ;;  %v346_v38 = vld [vmem:[%s1827_s3 + $0x3b8] sm:$0xff] }
  0xef   :  { %v910_v40 = vpack.c.bf16 %v346_v38, %v344_v37  ;;  %v1000_v37 = vpack.c.bf16 %v671_v36, %v670_v35  ;;  %v672_v38 = vld [vmem:[%s1831_s7 + $0x80] sm:$0xff] }
  0xf1   :  { %873 = vmatpush1.bf16.msra.mxu0 %v872_v43  ;;  %v348_v43 = vld [vmem:[%s1827_s3 + $0x3c8] sm:$0xff] }
  0xf2   :  { %875 = vmatprep.subr.bf16.mxu0 %v874_v44  ;;  %v350_v44 = vld [vmem:[%s1827_s3 + $0x3d8] sm:$0xff] }
  0xf3   :  { %v914_v46 = vpack.c.bf16 %v350_v44, %v348_v43  ;;  %v1006_v43 = vpack.c.bf16 %v675_v42, %v674_v41  ;;  %v676_v44 = vld [vmem:[%s1831_s7 + $0xa0] sm:$0xff] }
  0xf5   :  { %877 = vmatpush1.bf16.msra.mxu0 %v876_v49  ;;  %v352_v49 = vld [vmem:[%s1827_s3 + $0x3e8] sm:$0xff] }
  0xf6   :  { %879 = vmatprep.subr.bf16.mxu0 %v878_v50  ;;  %v354_v50 = vld [vmem:[%s1827_s3 + $0x3f8] sm:$0xff] }
  0xf7   :  { %v918_v55 = vpack.c.bf16 %v354_v50, %v352_v49  ;;  %v1012_v49 = vpack.c.bf16 %v679_v48, %v678_v47  ;;  %v567_v50 = vld [vmem:[%s1830_s6] sm:$0x3]  ;;  %s769_s6 = sshll.u32 %s1049_s17, 4  ;;  %s770_s6 = int_to_ptr.vmem [resolvable:$true] %s769_s6 }
  0xf8   :  { %s1022_s18 = scalar_lea.vmem %s770_s6, 128  ;;  %p1027_p1 = scmp.lt.s32.totalorder %s770_s6, %s770_s6 }
  0xf9   :  { %881 = vmatpush1.bf16.msra.mxu0 %v880_v58  ;;  %v920_v58 = vpack.c.bf16 %v353_v57, %v351_v56  ;;  %p1023_p0 = scmp.ne.s32.totalorder %s770_s6, %s1022_s18  ;;  %p1028_p2 = scmp.lt.s32.totalorder %s1022_s18, %s1022_s18 }
  0xfa   :  { %883 = vmatprep.subr.bf16.mxu0 %v882_v59  ;;  %v217_v59 = vand.u32 2147483647, %v213_v22  ;;  %v563_v22 = vld [vmem:[%s1829_s5 + $0x1a0] sm:$0xff] }
  0xfb   :  { %p1029_p3 = por %p1028_p2, %p1027_p1 }
  0xfc   :  { %vm221_vm4 = vcmp.lt.f32.partialorder %v217_v59, 0.5 }
  0xfd   :  { %885 = vmatpush1.bf16.msra.mxu0 %v884_v0  ;;  %p1030_p4 = pnand %p1029_p3, %p1023_p0 }
  0xfe   :  { %887 = vmatprep.subr.bf16.mxu0 %v886_v1  ;;  %v1048_v1 = vmov 0.0|0.0  }
 0x101   :  { %889 = vmatpush1.bf16.msra.mxu0 %v888_v8 }
 0x102   :  { %891 = vmatprep.subr.bf16.mxu0 %v890_v9 }
 0x105   :  { %893 = vmatpush1.bf16.msra.mxu0 %v892_v14  ;;  %v979_v14 = vpack.c.bf16 %v657_v11, %v656_v10 }
 0x106   :  { %895 = vmatprep.subr.bf16.mxu0 %v894_v15 }
 0x109   :  { %897 = vmatpush1.bf16.msra.mxu0 %v896_v19  ;;  %v661_v19 = vld [vmem:[%s1831_s7 + $0x28] sm:$0xff] }
 0x10a   :  { %899 = vmatprep.subr.bf16.mxu0 %v898_v21  ;;  %v985_v21 = vpack.c.bf16 %v661_v19, %v660_v51 }
 0x10d   :  { %901 = vmatpush1.bf16.msra.mxu0 %v900_v26  ;;  %v665_v26 = vld [vmem:[%s1831_s7 + $0x48] sm:$0xff] }
 0x10e   :  { %903 = vmatprep.subr.bf16.mxu0 %v902_v28  ;;  %v991_v28 = vpack.c.bf16 %v665_v26, %v664_v25 }
 0x111   :  { %905 = vmatpush1.bf16.msra.mxu0 %v904_v33  ;;  %v669_v33 = vld [vmem:[%s1831_s7 + $0x68] sm:$0xff] }
 0x112   :  { %907 = vmatprep.subr.bf16.mxu0 %v906_v34  ;;  %v997_v34 = vpack.c.bf16 %v669_v33, %v668_v32 }
 0x115   :  { %909 = vmatpush1.bf16.msra.mxu0 %v908_v39  ;;  %v673_v39 = vld [vmem:[%s1831_s7 + $0x88] sm:$0xff] }
 0x116   :  { %911 = vmatprep.subr.bf16.mxu0 %v910_v40  ;;  %v1003_v40 = vpack.c.bf16 %v673_v39, %v672_v38 }
 0x119   :  { %913 = vmatpush1.bf16.msra.mxu0 %v912_v45  ;;  %v677_v45 = vld [vmem:[%s1831_s7 + $0xa8] sm:$0xff] }
 0x11a   :  { %915 = vmatprep.subr.bf16.mxu0 %v914_v46  ;;  %v1009_v46 = vpack.c.bf16 %v677_v45, %v676_v44 }
 0x11d   :  { %917 = vmatpush1.bf16.msra.mxu0 %v916_v52  ;;  %v572_v52 = vrot.slane %v567_v50, %v1489_v5 }
 0x11e   :  { %919 = vmatprep.subr.bf16.mxu0 %v918_v55  ;;  %v576_v55 = vrot.slane %v567_v50, %v1492_v6 }
 0x121   :  { %921 = vmatpush1.bf16.msra.mxu0 %v920_v58 }
 0x124   :  { %782 = vmatmul.mubr.msk.f32.vlgmr.msra.gmra.mrb[0].mxu0 %vm221_vm4, %v1047_v27  ;;  %v565_v27 = vld [vmem:[%s1829_s5 + $0x1b0] sm:$0xff] }
 0x125   :  { %v976_v0 = vpack.c.bf16 %v565_v27, %v563_v22 }
 0x127   :  { %977 = vmatpush1.bf16.msra.mxu1 %v976_v0 }
 0x128   :  { %978 = vmatprep.subr.bf16.mxu1 %v1048_v1 }
 0x1f7   :  { %v504_v7 = vpop.f32.mrb[0].mxu0 }
 0x1f8   :  { %v1014_v8 = vadd.f32 %v504_v7, %v360_v3  ;;  %v506_v9 = vpop.f32.mrb[1].mxu0 }
 0x1f9   :  { %v1015_v12 = vadd.f32 %v506_v9, %v364_v4 }
 0x1fa   :  { %v509_v15 = vmax.f32 %v1014_v8, 0.0 }
 0x1fb   :  { %v510_v13 = vmax.f32 %v1015_v12, 0.0 }
 0x1fd   :  { %783 = vmatprep.mubr.msk.f32.mxu1 %vm579_vm5, %v510_v13 }
 0x1fe   :  { %648 = vmatmul.mubr.f32.vlgmr.msra.gmra.mrb[4].mxu1 %v509_v15 }
 0x1ff   :  { %980 = vmatpush1.bf16.msra.mxu1 %v979_v14 }
 0x200   :  { %981 = vmatprep.subr.bf16.mxu1 %v1048_v1 }
 0x203   :  { %983 = vmatpush1.bf16.msra.mxu1 %v982_v18 }
 0x204   :  { %984 = vmatprep.subr.bf16.mxu1 %v1048_v1 }
 0x207   :  { %986 = vmatpush1.bf16.msra.mxu1 %v985_v21 }
 0x208   :  { %987 = vmatprep.subr.bf16.mxu1 %v1048_v1 }
 0x20b   :  { %989 = vmatpush1.bf16.msra.mxu1 %v988_v53 }
 0x20c   :  { %990 = vmatprep.subr.bf16.mxu1 %v1048_v1 }
 0x20f   :  { %992 = vmatpush1.bf16.msra.mxu1 %v991_v28 }
 0x210   :  { %993 = vmatprep.subr.bf16.mxu1 %v1048_v1 }
 0x213   :  { %995 = vmatpush1.bf16.msra.mxu1 %v994_v31 }
 0x214   :  { %996 = vmatprep.subr.bf16.mxu1 %v1048_v1 }
 0x217   :  { %998 = vmatpush1.bf16.msra.mxu1 %v997_v34 }
 0x218   :  { %999 = vmatprep.subr.bf16.mxu1 %v1048_v1 }
 0x21b   :  { %1001 = vmatpush1.bf16.msra.mxu1 %v1000_v37 }
 0x21c   :  { %1002 = vmatprep.subr.bf16.mxu1 %v1048_v1 }
 0x21f   :  { %1004 = vmatpush1.bf16.msra.mxu1 %v1003_v40 }
 0x220   :  { %1005 = vmatprep.subr.bf16.mxu1 %v1048_v1 }
 0x223   :  { %1007 = vmatpush1.bf16.msra.mxu1 %v1006_v43 }
 0x224   :  { %1008 = vmatprep.subr.bf16.mxu1 %v1048_v1 }
 0x227   :  { %1010 = vmatpush1.bf16.msra.mxu1 %v1009_v46 }
 0x228   :  { %1011 = vmatprep.subr.bf16.mxu1 %v1048_v1 }
 0x22b   :  { %1013 = vmatpush1.bf16.msra.mxu1 %v1012_v49 }
 0x2d1   :  { %v649_v56 = vpop.f32.mrb[4].mxu1 }
 0x2d2   :  { %v650_v57 = vadd.f32 %v649_v56, %v572_v52  ;;  %v651_v58 = vpop.f32.mrb[5].mxu1 }
 0x2d3   :  { %v652_v59 = vadd.f32 %v651_v58, %v576_v55 }
 0x2d4   :  { %v654_v61 = vmax.f32 %v650_v57, 0.0 }
 0x2d5   :  { %v655_v60 = vmax.f32 %v652_v59, 0.0 }
 0x2d7   :  { %785 = vmatprep.mubr.msk.f32.mxu1 %vm687_vm6, %v655_v60 }
 0x2d8   :  { %756 = vmatmul.mubr.f32.vlgmr.msra.gmra.mrb[6].mxu1 %v654_v61 }
 0x3ab   :  { %v757_v63 = vpop.f32.mrb[6].mxu1 }
 0x3ac   :  { %v758_v54 = vadd.f32 %v784_v62, %v757_v63  ;;  %v759_v5 = vpop.f32.mrb[7].mxu1 }
 0x3ae   :  { %v761_v20 = vmax.f32 %v758_v54, 0.0 }
 0x3b0   :  { %762 = vst [vmem:[#allocation2] sm:$0xff] %v761_v20 }
 0x3b1   :  { %1033 = shalt.err (!%p1030_p4)
}
 0x3b2   :  { %s1034_s21 = scalar_lea.hbm %s1833_s9, 128 }
 0x3b3   :  { %p1035_p5 = scmp.ne.s32.totalorder %s1833_s9, %s1034_s21  ;;  %p1038_p6 = scmp.lt.u32.totalorder %s1034_s21, %s1833_s9 }
 0x3b5   :  { %p1040_p7 = pnand %p1038_p6, %p1035_p5 }
 0x3b7   :  { %1043 = shalt.err (!%p1040_p7)
}
 0x3b8   :  { %772 = dma.vmem_to_hbm [thread:$0]  %s770_s6, 128, %s1833_s9, [#allocation3]  }
 0x3b9   :  { %1044 = dma.done.wait [#allocation3], 128  }
 0x3ba   :  { %1045 = vsyncadd [#allocation3], 4294967168 }
 0x3bb   :  { %776 = vsyncpa [#allocation3], 1 }

</bundles_post_ra>
